<compile_context>
chip_gen: v6e
topology: v6e:2x2x1
jax: 0.10.0
libtpu: 0.0.40
codegen_flags: <defaults>
</compile_context>

<pallas_src>
import functools

import jax
import jax.numpy as jnp
from jax.experimental import pallas as pl
from jax.experimental.pallas import tpu as pltpu

LRP_E = 1e-2  # default LRP epsilon

# 512K elements per tile -> 5 streams x 2 buffers x 2 MiB (f32) = 20 MiB VMEM.
_MAX_TILE_ELEMS = 1 << 19
_VMEM_LIMIT = 32 << 20


def _round_up(x, m):
    return ((x + m - 1) // m) * m


def _pick_lanes(n):
    """Largest lane-dense width that divides n exactly (zero-copy layout)."""
    for lanes in (1024, 512, 256, 128):
        if n % lanes == 0:
            return lanes
    return None


def _choose_row_tile(rows, lanes):
    if rows <= 8:
        return rows                                  # block == full sublane dim
    cap = max(8, _MAX_TILE_ELEMS // lanes)           # VMEM footprint cap
    tr = _round_up(pl.cdiv(rows, 4), 8)              # >=4 steps so v7x megacore shards
    return int(min(tr, cap, _round_up(rows, 8)))


# --------------------------------------------------------------------------------------
# kernel: fused epsilon / z+ LRP rule for an element-wise sum
# --------------------------------------------------------------------------------------
def _lrp_sum_kernel(rk_ref, a_ref, b_ref, ra_ref, rb_ref, *, e, zplus):
    # Load in I/O dtype, compute in f32 (keeps |zs| >= e well conditioned for bf16).
    a = a_ref[...].astype(jnp.float32)
    b = b_ref[...].astype(jnp.float32)
    if zplus:
        a = jnp.maximum(a, 0.0)
        b = jnp.maximum(b, 0.0)
        zs = a + b + e                               # z >= 0 -> stabilizer is just +e
    else:
        z = a + b
        # TODO(synk): ISNetFunctionsZe's exact stabilizer form is not public; using
        # z + e*sign(z) with sign(0) -> +1.
        zs = z + e * jnp.where(z >= 0.0, 1.0, -1.0)
    # Exact divide (HBM-bound kernel, so this is free) -> preserves relevance conservation.
    s = rk_ref[...].astype(jnp.float32) / zs
    ra_ref[...] = (a * s).astype(ra_ref.dtype)
    rb_ref[...] = (b * s).astype(rb_ref.dtype)


# --------------------------------------------------------------------------------------
# same-shape path: flatten to a lane-dense [rows, LANES] slab (zero-copy when possible)
# --------------------------------------------------------------------------------------
def _lrp_sum_flat(kernel, rK, a, b):
    orig_shape = rK.shape
    out_dtype = rK.dtype
    T = int(rK.size)

    lanes = _pick_lanes(T)
    pad = 0
    if lanes is None:
        # TODO(synk): element count not a multiple of 128 -> one extra HBM pass for the pad.
        lanes = 128
        pad = _round_up(T, lanes) - T
    rows = (T + pad) // lanes
    tr = _choose_row_tile(rows, lanes)
    grid = (pl.cdiv(rows, tr),)

    def view(t):
        t = t.reshape(-1)
        if pad:
            t = jnp.pad(t, (0, pad))
        return t.reshape(rows, lanes)

    rk2, a2, b2 = view(rK), view(a), view(b)

    spec = pl.BlockSpec((tr, lanes), lambda i: (i, 0))
    out_sds = jax.ShapeDtypeStruct((rows, lanes), out_dtype)
    itemsize = jnp.dtype(out_dtype).itemsize

    ra2, rb2 = pl.pallas_call(
        kernel,
        out_shape=(out_sds, out_sds),
        grid=grid,
        in_specs=[spec, spec, spec],
        out_specs=(spec, spec),
        compiler_params=pltpu.CompilerParams(
            dimension_semantics=("parallel",),
            vmem_limit_bytes=_VMEM_LIMIT,
        ),
        cost_estimate=pl.CostEstimate(
            flops=5 * rows * lanes,
            transcendentals=rows * lanes,
            bytes_accessed=5 * rows * lanes * itemsize,
        ),
    )(rk2, a2, b2)

    if pad:
        ra = ra2.reshape(-1)[:T].reshape(orig_shape)
        rb = rb2.reshape(-1)[:T].reshape(orig_shape)
    else:
        ra = ra2.reshape(orig_shape)
        rb = rb2.reshape(orig_shape)
    return ra, rb


# --------------------------------------------------------------------------------------
# per-class path: rK is [N, K, ...], a/b are [N, ...]; reuse a/b blocks across the
# class axis instead of materializing the broadcast in HBM.
# --------------------------------------------------------------------------------------
def _lrp_sum_per_class(kernel, rK, a, b, lanes):
    orig_shape = rK.shape
    out_dtype = rK.dtype
    N, K = rK.shape[0], rK.shape[1]
    S = int(a.size) // N
    rows_s = S // lanes
    trs = _choose_row_tile(rows_s, lanes)
    n_s = pl.cdiv(rows_s, trs)

    rk4 = rK.reshape(N, K, rows_s, lanes)
    a3 = a.reshape(N, rows_s, lanes)
    b3 = b.reshape(N, rows_s, lanes)

    # class axis k is innermost + "arbitrary": a/b block index (n, s, 0) is constant
    # across k, so Pallas keeps the block resident instead of re-fetching it K times.
    rk_spec = pl.BlockSpec((None, None, trs, lanes), lambda n, s, k: (n, k, s, 0))
    ab_spec = pl.BlockSpec((None, trs, lanes), lambda n, s, k: (n, s, 0))
    out_spec = pl.BlockSpec((None, None, trs, lanes), lambda n, s, k: (n, k, s, 0))
    out_sds = jax.ShapeDtypeStruct((N, K, rows_s, lanes), out_dtype)

    ra4, rb4 = pl.pallas_call(
        kernel,
        out_shape=(out_sds, out_sds),
        grid=(N, n_s, K),
        in_specs=[rk_spec, ab_spec, ab_spec],
        out_specs=(out_spec, out_spec),
        compiler_params=pltpu.CompilerParams(
            dimension_semantics=("parallel", "parallel", "arbitrary"),
            vmem_limit_bytes=_VMEM_LIMIT,
        ),
        cost_estimate=pl.CostEstimate(
            flops=5 * int(rK.size),
            transcendentals=int(rK.size),
            bytes_accessed=3 * rK.nbytes + a.nbytes + b.nbytes,
        ),
    )(rk4, a3, b3)

    return ra4.reshape(orig_shape), rb4.reshape(orig_shape)


# --------------------------------------------------------------------------------------
# public wrapper
# --------------------------------------------------------------------------------------
def lrp_elementwise_sum(rK, a, b, e=LRP_E, rule="e"):
    """Returns (Ra, Rb): relevance redistributed to the two summed branches."""
    zplus = rule in ("z+", "z+e", "zplus")
    kernel = functools.partial(_lrp_sum_kernel, e=float(e), zplus=zplus)

    if (rK.ndim == a.ndim + 1 and a.shape == b.shape
            and rK.shape[0] == a.shape[0] and rK.shape[2:] == a.shape[1:]):
        S = int(a.size) // a.shape[0]
        lanes = _pick_lanes(S)
        if lanes is not None:
            return _lrp_sum_per_class(kernel, rK, a, b, lanes)
        # TODO(synk): per-sample size not a multiple of 128 -> fall back to a
        # materialized broadcast (extra HBM traffic) instead of a ragged lane layout.
        a = jnp.broadcast_to(a[:, None], rK.shape)
        b = jnp.broadcast_to(b[:, None], rK.shape)

    assert rK.shape == a.shape == b.shape, (rK.shape, a.shape, b.shape)
    return _lrp_sum_flat(kernel, rK, a, b)


# --------------------------------------------------------------------------------------
# pure-JAX reference (for correctness checks in __main__)
# --------------------------------------------------------------------------------------
def lrp_elementwise_sum_ref(rK, a, b, e=LRP_E, rule="e"):
    rK = rK.astype(jnp.float32)
    a = a.astype(jnp.float32)
    b = b.astype(jnp.float32)
    if rK.ndim == a.ndim + 1:
        a = a[:, None]
        b = b[:, None]
    if rule in ("z+", "z+e", "zplus"):
        a = jnp.maximum(a, 0.0)
        b = jnp.maximum(b, 0.0)
    z = a + b
    zs = z + e * jnp.where(z >= 0, 1.0, -1.0)
    s = rK / zs
    return a * s, b * s


def _max_rel_err(x, y):
    x = jnp.asarray(x, jnp.float32)
    y = jnp.asarray(y, jnp.float32)
    return float(jnp.max(jnp.abs(x - y) / (jnp.abs(y) + 1e-3)))


# --------------------------------------------------------------------------------------
# deterministic synthetic test
# --------------------------------------------------------------------------------------
if __name__ == "__main__":
    key = jax.random.PRNGKey(0)
    k1, k2, k3, k4, k5, k6, k7 = jax.random.split(key, 7)

    N, C, H, W = 2, 4, 16, 16
    a = jax.random.normal(k1, (N, C, H, W), jnp.float32)
    b = jax.random.normal(k2, (N, C, H, W), jnp.float32)
    rK = jax.random.normal(k3, (N, C, H, W), jnp.float32)

    # both rules, rK same shape as a/b (zero-copy flat path)
    for rule in ("e", "z+"):
        ra, rb = lrp_elementwise_sum(rK, a, b, e=LRP_E, rule=rule)
        ra = jax.block_until_ready(ra)
        rb = jax.block_until_ready(rb)
        assert ra.shape == rK.shape and rb.shape == rK.shape
        assert ra.dtype == rK.dtype and rb.dtype == rK.dtype
        assert bool(jnp.all(jnp.isfinite(ra))) and bool(jnp.all(jnp.isfinite(rb)))
        ra_ref, rb_ref = lrp_elementwise_sum_ref(rK, a, b, e=LRP_E, rule=rule)
        err = max(_max_rel_err(ra, ra_ref), _max_rel_err(rb, rb_ref))
        assert err < 1e-3, f"rule={rule} rel err {err}"

    # ISNet per-class relevance convention: rK carries an extra class dim
    # (no broadcast materialization; a/b blocks reused across the class axis)
    K_cls = 3
    rK5 = jax.random.normal(k4, (N, K_cls, C, H, W), jnp.float32)
    ra5, rb5 = lrp_elementwise_sum(rK5, a, b, e=LRP_E, rule="e")
    ra5 = jax.block_until_ready(ra5)
    rb5 = jax.block_until_ready(rb5)
    assert ra5.shape == (N, K_cls, C, H, W) and rb5.shape == (N, K_cls, C, H, W)
    ra5_ref, rb5_ref = lrp_elementwise_sum_ref(rK5, a, b, e=LRP_E, rule="e")
    err5 = max(_max_rel_err(ra5, ra5_ref), _max_rel_err(rb5, rb5_ref))
    assert err5 < 1e-3, f"per-class rel err {err5}"

    # bf16 I/O stays bf16 across the boundary (arithmetic in f32 in-kernel)
    a16 = a.astype(jnp.bfloat16)
    b16 = b.astype(jnp.bfloat16)
    rK16 = rK.astype(jnp.bfloat16)
    ra16, rb16 = lrp_elementwise_sum(rK16, a16, b16, e=LRP_E, rule="e")
    ra16 = jax.block_until_ready(ra16)
    rb16 = jax.block_until_ready(rb16)
    assert ra16.dtype == jnp.bfloat16 and rb16.dtype == jnp.bfloat16
    ra16_ref, rb16_ref = lrp_elementwise_sum_ref(rK16, a16, b16, e=LRP_E, rule="e")
    err16 = max(_max_rel_err(ra16, ra16_ref), _max_rel_err(rb16, rb16_ref))
    assert err16 < 2e-2, f"bf16 rel err {err16}"

    # odd total size -> padding fallback path
    ao = jax.random.normal(k5, (2, 3, 5, 7), jnp.float32)
    bo = jax.random.normal(k6, (2, 3, 5, 7), jnp.float32)
    rKo = jax.random.normal(k7, (2, 3, 5, 7), jnp.float32)
    rao, rbo = lrp_elementwise_sum(rKo, ao, bo, e=LRP_E, rule="e")
    rao = jax.block_until_ready(rao)
    rbo = jax.block_until_ready(rbo)
    rao_ref, rbo_ref = lrp_elementwise_sum_ref(rKo, ao, bo, e=LRP_E, rule="e")
    erro = max(_max_rel_err(rao, rao_ref), _max_rel_err(rbo, rbo_ref))
    assert erro < 1e-3, f"odd-shape rel err {erro}"

    print("KERNEL_OK")
</pallas_src>

<mosaic_0001>
module attributes {stable_mosaic.version = 11 : i64} {
  func.func @_lrp_sum_kernel(%arg0: i32, %arg1: memref<2x1024xf32, #tpu.memory_space<vmem>>, %arg2: memref<2x1024xf32, #tpu.memory_space<vmem>>, %arg3: memref<2x1024xf32, #tpu.memory_space<vmem>>, %arg4: memref<2x1024xf32, #tpu.memory_space<vmem>>, %arg5: memref<2x1024xf32, #tpu.memory_space<vmem>>) attributes {dimension_semantics = [#tpu.dimension_semantics<parallel>], iteration_bounds = array<i64: 1>, scalar_prefetch = 0 : i64, scratch_operands = 0 : i64, tpu.core_type = #tpu.core_type<tc>, window_params = [{transform_indices = @transform_0, window_bounds = array<i64: 2, 1024>}, {transform_indices = @transform_1, window_bounds = array<i64: 2, 1024>}, {transform_indices = @transform_2, window_bounds = array<i64: 2, 1024>}, {transform_indices = @transform_3, window_bounds = array<i64: 2, 1024>}, {transform_indices = @transform_4, window_bounds = array<i64: 2, 1024>}]} {
    %c0 = arith.constant 0 : index
    %c0_0 = arith.constant 0 : index
    %0 = vector.load %arg2[%c0, %c0_0] : memref<2x1024xf32, #tpu.memory_space<vmem>>, vector<2x1024xf32>
    %c0_1 = arith.constant 0 : index
    %c0_2 = arith.constant 0 : index
    %1 = vector.load %arg3[%c0_1, %c0_2] : memref<2x1024xf32, #tpu.memory_space<vmem>>, vector<2x1024xf32>
    %2 = arith.addf %0, %1 : vector<2x1024xf32>
    %cst = arith.constant 0.000000e+00 : f32
    %3 = vector.broadcast %cst : f32 to vector<2x1024xf32>
    %4 = arith.cmpf oge, %2, %3 : vector<2x1024xf32>
    %cst_3 = arith.constant 1.000000e+00 : f32
    %cst_4 = arith.constant -1.000000e+00 : f32
    %5 = vector.broadcast %cst_3 : f32 to vector<2x1024xf32>
    %6 = vector.broadcast %cst_4 : f32 to vector<2x1024xf32>
    %7 = arith.select %4, %5, %6 : vector<2x1024xi1>, vector<2x1024xf32>
    %cst_5 = arith.constant 0.00999999977 : f32
    %8 = vector.broadcast %cst_5 : f32 to vector<2x1024xf32>
    %9 = arith.mulf %8, %7 : vector<2x1024xf32>
    %10 = arith.addf %2, %9 : vector<2x1024xf32>
    %c0_6 = arith.constant 0 : index
    %c0_7 = arith.constant 0 : index
    %11 = vector.load %arg1[%c0_6, %c0_7] : memref<2x1024xf32, #tpu.memory_space<vmem>>, vector<2x1024xf32>
    %12 = arith.divf %11, %10 : vector<2x1024xf32>
    %13 = arith.mulf %0, %12 : vector<2x1024xf32>
    %c0_8 = arith.constant 0 : index
    %c0_9 = arith.constant 0 : index
    %14 = vector.load %arg4[%c0_8, %c0_9] : memref<2x1024xf32, #tpu.memory_space<vmem>>, vector<2x1024xf32>
    tpu.vector_store %arg4[%c0_8, %c0_9], %13 {strides = array<i32>} : memref<2x1024xf32, #tpu.memory_space<vmem>>, vector<2x1024xf32>,
    %15 = arith.mulf %1, %12 : vector<2x1024xf32>
    %c0_10 = arith.constant 0 : index
    %c0_11 = arith.constant 0 : index
    %16 = vector.load %arg5[%c0_10, %c0_11] : memref<2x1024xf32, #tpu.memory_space<vmem>>, vector<2x1024xf32>
    tpu.vector_store %arg5[%c0_10, %c0_11], %15 {strides = array<i32>} : memref<2x1024xf32, #tpu.memory_space<vmem>>, vector<2x1024xf32>,
    return
  }
  func.func @transform_0(%arg0: i32) -> (i32, i32) {
    %c0_i32 = arith.constant 0 : i32
    %c0_i32_0 = arith.constant 0 : i32
    return %arg0, %c0_i32 : i32, i32
  }
  func.func @transform_1(%arg0: i32) -> (i32, i32) {
    %c0_i32 = arith.constant 0 : i32
    %c0_i32_0 = arith.constant 0 : i32
    return %arg0, %c0_i32 : i32, i32
  }
  func.func @transform_2(%arg0: i32) -> (i32, i32) {
    %c0_i32 = arith.constant 0 : i32
    %c0_i32_0 = arith.constant 0 : i32
    return %arg0, %c0_i32 : i32, i32
  }
  func.func @transform_3(%arg0: i32) -> (i32, i32) {
    %c0_i32 = arith.constant 0 : i32
    %c0_i32_0 = arith.constant 0 : i32
    return %arg0, %c0_i32 : i32, i32
  }
  func.func @transform_4(%arg0: i32) -> (i32, i32) {
    %c0_i32 = arith.constant 0 : i32
    %c0_i32_0 = arith.constant 0 : i32
    return %arg0, %c0_i32 : i32, i32
  }
}

</mosaic_0001>

<bundles_post_ra>
// kernel: tpu_custom_call.1
= control target key start
LH: loop header
LB: loop body
LE: loop exit
PB: predicated region body
PF: predicated region fallthrough
CT: control target
= control target key end

     0   :  { %10 = vsyncpa [#allocation3], 0  ;;  %s275_s0 = inlined_call_operand.hbm [shape: f32[2,1024], index: 0, kind: input, shape index: {}]   ;;  %s276_s1 = inlined_call_operand.hbm [shape: f32[2,1024], index: 1, kind: input, shape index: {}]   ;;  %s277_s2 = inlined_call_operand.hbm [shape: f32[2,1024], index: 2, kind: input, shape index: {}]   ;;  %s278_s3 = inlined_call_operand.hbm [shape: f32[2,1024], index: 3, kind: output, shape index: {0}]   ;;  %s279_s4 = inlined_call_operand.hbm [shape: f32[2,1024], index: 4, kind: output, shape index: {1}]  }
   0x1   :  { %11 = vsyncpa [#allocation6], 0 }
   0x2   :  { %12 = vsyncpa [#allocation4], 0 }
   0x3   :  { %13 = vsyncpa [#allocation10], 0  ;;  %s229_s15 = smov [#allocation5]   ;;  %s230_s17 = smov [#allocation2]  }
   0x4   :  { %s30_s16 = sshll.u32 %s229_s15, 4  ;;  %s20_s18 = sshll.u32 %s230_s17, 4  ;;  %s31_s16 = int_to_ptr.vmem [resolvable:$true] %s30_s16  ;;  %s21_s18 = int_to_ptr.vmem [resolvable:$true] %s20_s18 }
   0x5   :  { %s129_s19 = scalar_lea.vmem %s31_s16, 256  ;;  %p134_p1 = scmp.lt.s32.totalorder %s31_s16, %s31_s16 }
   0x6   :  { %p130_p0 = scmp.ne.s32.totalorder %s31_s16, %s129_s19  ;;  %p135_p2 = scmp.lt.s32.totalorder %s129_s19, %s129_s19 }
   0x8   :  { %p136_p3 = por %p135_p2, %p134_p1 }
   0xa   :  { %p137_p4 = pnand %p136_p3, %p130_p0 }
   0xc   :  { %140 = shalt.err (!%p137_p4)
}
   0xd   :  { %33 = dma.hbm_to_vmem [thread:$0]  %s276_s1, 256, %s31_s16, [#allocation6]  }
   0xe   :  { %s149_s22 = scalar_lea.vmem %s21_s18, 256  ;;  %p154_p6 = scmp.lt.s32.totalorder %s21_s18, %s21_s18 }
   0xf   :  { %p150_p5 = scmp.ne.s32.totalorder %s21_s18, %s149_s22  ;;  %p155_p7 = scmp.lt.s32.totalorder %s149_s22, %s149_s22 }
  0x11   :  { %p156_p8 = por %p155_p7, %p154_p6 }
  0x13   :  { %p157_p9 = pnand %p156_p8, %p150_p5 }
  0x15   :  { %160 = shalt.err (!%p157_p9)
}
  0x16   :  { %23 = dma.hbm_to_vmem [thread:$0]  %s275_s0, 256, %s21_s18, [#allocation3]  }
  0x17   :  { %s231_s25 = smov [#allocation7]  }
  0x18   :  { %s40_s26 = sshll.u32 %s231_s25, 4  ;;  %s41_s26 = int_to_ptr.vmem [resolvable:$true] %s40_s26 }
  0x19   :  { %s169_s27 = scalar_lea.vmem %s41_s26, 256  ;;  %p174_p11 = scmp.lt.s32.totalorder %s41_s26, %s41_s26 }
  0x1a   :  { %p170_p10 = scmp.ne.s32.totalorder %s41_s26, %s169_s27  ;;  %p175_p12 = scmp.lt.s32.totalorder %s169_s27, %s169_s27 }
  0x1c   :  { %p176_p13 = por %p175_p12, %p174_p11 }
  0x1e   :  { %p177_p0 = pnand %p176_p13, %p170_p10 }
  0x20   :  { %180 = shalt.err (!%p177_p0)
}
  0x21   :  { %43 = dma.hbm_to_vmem [thread:$0]  %s277_s2, 256, %s41_s26, [#allocation6]  }
  0x22   :  { %221 = dma.done.wait [#allocation3], 256  }
  0x23   :  { %222 = vsyncadd [#allocation3], 4294967040 }
  0x24   :  { %223 = dma.done.wait [#allocation6], 512  }
  0x25   :  { %224 = vsyncadd [#allocation6], 4294966784  ;;  %v53_v0 = vld [vmem:[#allocation5] sm:$0xff]  ;;  %v55_v1 = vld [vmem:[#allocation7] sm:$0xff]  ;;  %v232_v6 = vmov -1.0   ;;  %s233_s0 = smov [#allocation8]  }
  0x26   :  { %v57_v2 = vadd.f32 %v55_v1, %v53_v0  ;;  %v54_v3 = vld [vmem:[#allocation5 + $0x8] sm:$0xff]  ;;  %v56_v4 = vld [vmem:[#allocation7 + $0x8] sm:$0xff]  ;;  %v67_v13 = vld [vmem:[#allocation2] sm:$0xff]  ;;  %s87_s2 = sshll.u32 %s233_s0, 4  ;;  %s234_s29 = smov [#allocation9]   ;;  %s88_s2 = int_to_ptr.vmem [resolvable:$true] %s87_s2 }
  0x27   :  { %v58_v5 = vadd.f32 %v56_v4, %v54_v3  ;;  %v68_v14 = vld [vmem:[#allocation2 + $0x8] sm:$0xff]  ;;  %s97_s30 = sshll.u32 %s234_s29, 4  ;;  %s181_s5 = scalar_lea.vmem %s88_s2, 256  ;;  %s98_s30 = int_to_ptr.vmem [resolvable:$true] %s97_s30 }
  0x28   :  { %vm59_vm0 = vcmp.ge.f32.partialorder %v57_v2, 0.0  ;;  %p182_p1 = scmp.ne.s32.totalorder %s88_s2, %s181_s5  ;;  %p186_p2 = scmp.lt.s32.totalorder %s88_s2, %s88_s2 }
  0x29   :  { %v61_v7 = vsel %vm59_vm0, 1.0, %v232_v6  ;;  %vm60_vm1 = vcmp.ge.f32.partialorder %v58_v5, 0.0  ;;  %p187_p3 = scmp.lt.s32.totalorder %s181_s5, %s181_s5 }
  0x2a   :  { %v63_v8 = vmul.f32 0.01, %v61_v7  ;;  %v62_v9 = vsel %vm60_vm1, 1.0, %v232_v6 }
  0x2b   :  { %v64_v10 = vmul.f32 0.01, %v62_v9  ;;  %p188_p4 = por %p187_p3, %p186_p2 }
  0x2c   :  { %v65_v11 = vadd.f32 %v63_v8, %v57_v2 }
  0x2d   :  { %v66_v12 = vadd.f32 %v64_v10, %v58_v5  ;;  %p189_p5 = pnand %p188_p4, %p182_p1 }
  0x2e   :  { %117 = vrcp.f32 %v65_v11 }
  0x2f   :  { %119 = vrcp.f32 %v66_v12 }
  0x3b   :  { %v118_v15 = vpop.eup %117 }
  0x3c   :  { %v120_v16 = vpop.eup %119  ;;  %v70_v17 = vmul.f32 %v118_v15, %v67_v13 }
  0x3d   :  { %v72_v18 = vmul.f32 %v120_v16, %v68_v14 }
  0x3e   :  { %v73_v19 = vmul.f32 %v70_v17, %v53_v0  ;;  %v77_v20 = vmul.f32 %v70_v17, %v55_v1 }
  0x3f   :  { %v74_v21 = vmul.f32 %v72_v18, %v54_v3  ;;  %v78_v22 = vmul.f32 %v72_v18, %v56_v4 }
  0x40   :  { %75 = vst [vmem:[#allocation8] sm:$0xff] %v73_v19  ;;  %79 = vst [vmem:[#allocation9] sm:$0xff] %v77_v20 }
  0x41   :  { %76 = vst [vmem:[#allocation8 + $0x8] sm:$0xff] %v74_v21  ;;  %80 = vst [vmem:[#allocation9 + $0x8] sm:$0xff] %v78_v22 }
  0x42   :  { %192 = shalt.err (!%p189_p5)
}
  0x43   :  { %90 = dma.vmem_to_hbm [thread:$0]  %s88_s2, 256, %s278_s3, [#allocation4]  }
  0x44   :  { %s201_s8 = scalar_lea.vmem %s98_s30, 256  ;;  %p206_p7 = scmp.lt.s32.totalorder %s98_s30, %s98_s30 }
  0x45   :  { %p202_p6 = scmp.ne.s32.totalorder %s98_s30, %s201_s8  ;;  %p207_p8 = scmp.lt.s32.totalorder %s201_s8, %s201_s8 }
  0x47   :  { %p208_p9 = por %p207_p8, %p206_p7 }
  0x49   :  { %p209_p10 = pnand %p208_p9, %p202_p6 }
  0x4b   :  { %212 = shalt.err (!%p209_p10)
}
  0x4c   :  { %100 = dma.vmem_to_hbm [thread:$0]  %s98_s30, 256, %s279_s4, [#allocation10]  }
  0x4d   :  { %225 = dma.done.wait [#allocation4], 256  }
  0x4e   :  { %226 = vsyncadd [#allocation4], 4294967040 }
  0x4f   :  { %227 = dma.done.wait [#allocation10], 256  }
  0x50   :  { %228 = vsyncadd [#allocation10], 4294967040 }
  0x51   :  { %107 = vsyncpa [#allocation3], 1 }
  0x52   :  { %108 = vsyncpa [#allocation6], 1 }
  0x53   :  { %109 = vsyncpa [#allocation4], 1 }
  0x54   :  { %110 = vsyncpa [#allocation10], 1 }

</bundles_post_ra>
